<compile_context>
chip_gen: v6e
topology: v6e:2x2x1
jax: 0.10.0
libtpu: 0.0.40
codegen_flags: <defaults>
</compile_context>

<pallas_src>
import functools

import jax
import jax.numpy as jnp
from jax import lax
from jax.experimental import pallas as pl
from jax.experimental.pallas import tpu as pltpu


def _clip_loss_kernel(scale_ref, img_ref, txt_ref, out_ref,
                      acc_img, m_img, l_img, m_txt, l_txt, acc_txt,
                      *, matmul_dtype, inv_2n):
    i = pl.program_id(0)            # batch (image-row) tile index
    j = pl.program_id(1)            # text  (column)    tile index
    nb = pl.num_programs(0)
    nt = pl.num_programs(1)

    # ---- init --------------------------------------------------------------
    @pl.when(jnp.logical_and(i == 0, j == 0))
    def _():
        acc_img[...] = jnp.zeros_like(acc_img)
        acc_txt[...] = jnp.zeros_like(acc_txt)

    @pl.when(j == 0)                              # new batch tile: reset row lse
    def _():
        m_img[...] = jnp.full(m_img.shape, -jnp.inf, dtype=jnp.float32)
        l_img[...] = jnp.zeros_like(l_img)

    @pl.when(i == 0)                              # first pass over text tile j
    def _():
        m_txt[j] = jnp.full(m_txt.shape[1:], -jnp.inf, dtype=jnp.float32)
        l_txt[j] = jnp.zeros(l_txt.shape[1:], dtype=jnp.float32)

    scale = scale_ref[0]

    # Fold logit_scale into the (tm, D) image tile (f32 mul, N/D x cheaper than
    # scaling the (tm, tn) logits), then cast operands to the MXU dtype.
    img_f32 = img_ref[...].astype(jnp.float32) * scale            # (tm, D)
    img_mxu = img_f32.astype(matmul_dtype)
    txt_mxu = txt_ref[...].astype(matmul_dtype)                   # (tn, D)

    # Logits tile: rows = images of tile i, cols = texts of tile j.
    logits = lax.dot_general(
        img_mxu, txt_mxu,
        dimension_numbers=(((1,), (1,)), ((), ())),
        preferred_element_type=jnp.float32,
    )                                                              # (tm, tn) f32

    # ---- image direction: online row-wise logsumexp over column tiles ------
    row_max = jnp.max(logits, axis=-1, keepdims=True)              # (tm, 1)
    m_row_new = jnp.maximum(m_img[...], row_max)
    l_img[...] = (l_img[...] * jnp.exp(m_img[...] - m_row_new)
                  + jnp.sum(jnp.exp(logits - m_row_new), axis=-1, keepdims=True))
    m_img[...] = m_row_new

    # ---- text direction: online column-wise logsumexp over batch tiles -----
    col_max = jnp.max(logits, axis=0, keepdims=True)               # (1, tn)
    m_col_old = m_txt[j]
    m_col_new = jnp.maximum(m_col_old, col_max)
    l_col_new = (l_txt[j] * jnp.exp(m_col_old - m_col_new)
                 + jnp.sum(jnp.exp(logits - m_col_new), axis=0, keepdims=True))
    m_txt[j] = m_col_new
    l_txt[j] = l_col_new

    # ---- diagonal (true pairs): only the i == j block holds them -----------
    # Computed from features (f32 VPU mul + lane reduce), not from a full-tile
    # iota/mask/XLU reduce.  Subtracted once per direction -> factor 2.
    @pl.when(i == j)
    def _():
        diag = jnp.sum(img_f32 * txt_ref[...].astype(jnp.float32),
                       axis=-1, keepdims=True)                     # (tm, 1)
        acc_img[...] = acc_img[...] - 2.0 * diag

    # ---- finish row lse for this batch tile --------------------------------
    @pl.when(j == nt - 1)
    def _():
        acc_img[...] = acc_img[...] + m_img[...] + jnp.log(l_img[...])

    # ---- finish column lse for this text tile ------------------------------
    @pl.when(i == nb - 1)
    def _():
        acc_txt[...] = acc_txt[...] + jnp.sum(m_col_new + jnp.log(l_col_new),
                                              axis=-1, keepdims=True)

    # ---- epilogue -----------------------------------------------------------
    @pl.when(jnp.logical_and(i == nb - 1, j == nt - 1))
    def _():
        total = jnp.sum(acc_img[...], axis=0, keepdims=True) + acc_txt[...]
        out_ref[...] = total * inv_2n


def _pick_tile(n, itemsize):
    # bf16 packs two rows per sublane -> (16, 128) min tile; f32 -> (8, 128).
    min_mult = 16 if itemsize < 4 else 8
    cap = 256  # matches the 256x256 MXU on v6e/v7x; 128 also fine on v5e via batch_tile=.
    if n <= cap:
        return n                    # a block equal to the full dim is always legal
    for cand in range(cap, min_mult - 1, -min_mult):
        if n % cand == 0:
            return cand
    return n                        # no aligned divisor; fall back to one full tile


def clip_loss(image_features, text_features, logit_scale, *, batch_tile=None,
              matmul_dtype=None):
    """Pallas TPU implementation of ClipLoss.forward (world_size=1). Scalar out."""
    assert image_features.ndim == 2 and image_features.shape == text_features.shape
    assert image_features.dtype == text_features.dtype
    N, D = image_features.shape
    itemsize = jnp.dtype(image_features.dtype).itemsize

    if matmul_dtype is None:
        # bf16 inputs feed the MXU natively; f32 inputs keep full precision.
        matmul_dtype = (jnp.bfloat16 if image_features.dtype == jnp.bfloat16
                        else jnp.float32)

    if batch_tile is None:
        batch_tile = _pick_tile(N, itemsize)
    tile = batch_tile
    min_mult = 16 if itemsize < 4 else 8
    assert N % tile == 0, "batch_tile must divide N"
    assert tile == N or tile % min_mult == 0, \
        f"batch_tile must be a multiple of {min_mult} (sublane/packing) or equal N"

    nb = nt = N // tile
    grid = (nb, nt)

    # Explicit scoped-VMEM budget: double-buffered image + text tiles, a few
    # live (tile, tile) f32 temporaries, accumulator scratch, plus headroom.
    est = (2 * tile * D * itemsize            # image tile, double buffered
           + 2 * tile * D * itemsize          # text tile, double buffered
           + 8 * tile * tile * 4              # logits / exp / max temporaries (f32)
           + 4 * tile * 128 * 4               # (tile, 1) & (1, 1) scratch, lane-padded
           + 2 * nt * 8 * tile * 4            # column m/l scratch, sublane-padded
           + (1 << 20))                       # fixed headroom
    vmem_limit = int(min(max(2 * est, 32 << 20), 64 << 20))

    scale = jnp.asarray(logit_scale, jnp.float32).reshape((1,))
    kernel = functools.partial(_clip_loss_kernel, matmul_dtype=matmul_dtype,
                               inv_2n=1.0 / (2.0 * float(N)))

    out = pl.pallas_call(
        kernel,
        out_shape=jax.ShapeDtypeStruct((1, 1), jnp.float32),
        grid_spec=pltpu.PrefetchScalarGridSpec(
            num_scalar_prefetch=1,            # logit_scale -> SMEM
            grid=grid,
            in_specs=[
                # Image tile: constant over j (held), walks i.
                pl.BlockSpec((tile, D), lambda i, j, s: (i, 0)),
                # Text tile: walks j (inner axis), pipelined.
                pl.BlockSpec((tile, D), lambda i, j, s: (j, 0)),
            ],
            out_specs=pl.BlockSpec((1, 1), lambda i, j, s: (0, 0)),
            scratch_shapes=[
                pltpu.VMEM((tile, 1), jnp.float32),   # acc_img: per-row (lse - 2*diag)
                pltpu.VMEM((tile, 1), jnp.float32),   # m_img:   row running max
                pltpu.VMEM((tile, 1), jnp.float32),   # l_img:   row running sum
                pltpu.VMEM((nt, 1, tile), jnp.float32),  # m_txt: col running max / tile
                pltpu.VMEM((nt, 1, tile), jnp.float32),  # l_txt: col running sum / tile
                pltpu.VMEM((1, 1), jnp.float32),      # acc_txt: sum of finished col lse
            ],
        ),
        compiler_params=pltpu.CompilerParams(
            dimension_semantics=("arbitrary", "arbitrary"),
            vmem_limit_bytes=vmem_limit,
        ),
    )(scale, image_features, text_features)
    return out[0, 0]


def _reference(image_features, text_features, logit_scale):
    img = image_features.astype(jnp.float32)
    txt = text_features.astype(jnp.float32)
    logits_per_image = logit_scale * jnp.dot(img, txt.T,
                                             precision=jax.lax.Precision.HIGHEST)
    logits_per_text = logits_per_image.T
    n = img.shape[0]
    labels = jnp.arange(n)

    def ce(logits):
        logp = jax.nn.log_softmax(logits, axis=-1)
        return -jnp.mean(logp[jnp.arange(n), labels])

    return 0.5 * (ce(logits_per_image) + ce(logits_per_text))


if __name__ == "__main__":
    N, D = 32, 64                      # batch=32, embed dim=64
    logit_scale = 14.285714            # ~ exp(log(1/0.07)), CLIP default

    key = jax.random.PRNGKey(0)
    k1, k2 = jax.random.split(key)
    img = jax.random.normal(k1, (N, D), dtype=jnp.float32)
    txt = jax.random.normal(k2, (N, D), dtype=jnp.float32)
    # CLIP features are L2-normalized before the loss.
    img = img / jnp.linalg.norm(img, axis=-1, keepdims=True)
    txt = txt / jnp.linalg.norm(txt, axis=-1, keepdims=True)

    ref = _reference(img, txt, logit_scale)

    # f32 path, multi-tile 2-D grid (4 x 4 tiles of 8 rows) to exercise both
    # online accumulations.  Tolerance covers the TPU default matmul precision
    # of the in-kernel MXU dot vs the HIGHEST-precision XLA reference.
    loss_f32_tiled = jax.block_until_ready(clip_loss(img, txt, logit_scale, batch_tile=8))
    assert jnp.allclose(loss_f32_tiled, ref, rtol=1e-3, atol=2e-2), (loss_f32_tiled, ref)

    # f32 path, default (single-tile) grid.
    loss_f32_auto = jax.block_until_ready(clip_loss(img, txt, logit_scale))
    assert jnp.allclose(loss_f32_auto, ref, rtol=1e-3, atol=2e-2), (loss_f32_auto, ref)

    # bf16 path (native MXU dtype), multi-tile grid (2 x 2 tiles of 16 rows).
    img_bf16 = img.astype(jnp.bfloat16)
    txt_bf16 = txt.astype(jnp.bfloat16)
    ref_bf16 = _reference(img_bf16, txt_bf16, logit_scale)
    loss_bf16 = jax.block_until_ready(
        clip_loss(img_bf16, txt_bf16, logit_scale, batch_tile=16))
    assert jnp.allclose(loss_bf16, ref_bf16, rtol=5e-3, atol=6e-2), (loss_bf16, ref_bf16)

    print("KERNEL_OK")
</pallas_src>

<mosaic_0001>
module attributes {stable_mosaic.version = 11 : i64} {
  func.func @_clip_loss_kernel(%arg0: i32, %arg1: i32, %arg2: memref<1xf32, #tpu.memory_space<smem>>, %arg3: memref<8x64xf32, #tpu.memory_space<vmem>>, %arg4: memref<8x64xf32, #tpu.memory_space<vmem>>, %arg5: memref<1x1xf32, #tpu.memory_space<vmem>>, %arg6: memref<8x1xf32, #tpu.memory_space<vmem>>, %arg7: memref<8x1xf32, #tpu.memory_space<vmem>>, %arg8: memref<8x1xf32, #tpu.memory_space<vmem>>, %arg9: memref<4x1x8xf32, #tpu.memory_space<vmem>>, %arg10: memref<4x1x8xf32, #tpu.memory_space<vmem>>, %arg11: memref<1x1xf32, #tpu.memory_space<vmem>>) attributes {dimension_semantics = [#tpu.dimension_semantics<arbitrary>, #tpu.dimension_semantics<arbitrary>], iteration_bounds = array<i64: 4, 4>, scalar_prefetch = 1 : i64, scratch_operands = 6 : i64, tpu.core_type = #tpu.core_type<tc>, window_params = [{transform_indices = @transform_0, window_bounds = array<i64: 8, 64>}, {transform_indices = @transform_1, window_bounds = array<i64: 8, 64>}, {pipeline_mode = #tpu.pipeline_mode<synchronous>, transform_indices = @transform_2, window_bounds = array<i64: 1, 1>}]} {
    %c0_i32 = arith.constant 0 : i32
    %0 = arith.cmpi eq, %arg0, %c0_i32 : i32
    %c0_i32_0 = arith.constant 0 : i32
    %1 = arith.cmpi eq, %arg1, %c0_i32_0 : i32
    %2 = arith.andi %0, %1 : i1
    %3 = arith.extui %2 : i1 to i32
    %c0_i32_1 = arith.constant 0 : i32
    %4 = arith.cmpi ne, %3, %c0_i32_1 : i32
    scf.if %4 {
      %cst_39 = arith.constant 0.000000e+00 : f32
      %74 = vector.broadcast %cst_39 : f32 to vector<8x1xf32>
      %c0_40 = arith.constant 0 : index
      %c0_41 = arith.constant 0 : index
      %75 = vector.load %arg6[%c0_40, %c0_41] : memref<8x1xf32, #tpu.memory_space<vmem>>, vector<8x1xf32>
      tpu.vector_store %arg6[%c0_40, %c0_41], %74 {strides = array<i32>} : memref<8x1xf32, #tpu.memory_space<vmem>>, vector<8x1xf32>,
      %cst_42 = arith.constant 0.000000e+00 : f32
      %76 = vector.broadcast %cst_42 : f32 to vector<1x1xf32>
      %c0_43 = arith.constant 0 : index
      %c0_44 = arith.constant 0 : index
      %77 = vector.load %arg11[%c0_43, %c0_44] : memref<1x1xf32, #tpu.memory_space<vmem>>, vector<1x1xf32>
      tpu.vector_store %arg11[%c0_43, %c0_44], %76 {strides = array<i32>} : memref<1x1xf32, #tpu.memory_space<vmem>>, vector<1x1xf32>,
    } else {
    }
    %c0_i32_2 = arith.constant 0 : i32
    %5 = arith.cmpi eq, %arg1, %c0_i32_2 : i32
    %6 = arith.extui %5 : i1 to i32
    %c0_i32_3 = arith.constant 0 : i32
    %7 = arith.cmpi ne, %6, %c0_i32_3 : i32
    scf.if %7 {
      %cst_39 = arith.constant 0xFF800000 : f32
      %74 = vector.broadcast %cst_39 : f32 to vector<8x1xf32>
      %c0_40 = arith.constant 0 : index
      %c0_41 = arith.constant 0 : index
      %75 = vector.load %arg7[%c0_40, %c0_41] : memref<8x1xf32, #tpu.memory_space<vmem>>, vector<8x1xf32>
      tpu.vector_store %arg7[%c0_40, %c0_41], %74 {strides = array<i32>} : memref<8x1xf32, #tpu.memory_space<vmem>>, vector<8x1xf32>,
      %cst_42 = arith.constant 0.000000e+00 : f32
      %76 = vector.broadcast %cst_42 : f32 to vector<8x1xf32>
      %c0_43 = arith.constant 0 : index
      %c0_44 = arith.constant 0 : index
      %77 = vector.load %arg8[%c0_43, %c0_44] : memref<8x1xf32, #tpu.memory_space<vmem>>, vector<8x1xf32>
      tpu.vector_store %arg8[%c0_43, %c0_44], %76 {strides = array<i32>} : memref<8x1xf32, #tpu.memory_space<vmem>>, vector<8x1xf32>,
    } else {
    }
    %c0_i32_4 = arith.constant 0 : i32
    %8 = arith.cmpi eq, %arg0, %c0_i32_4 : i32
    %9 = arith.extui %8 : i1 to i32
    %c0_i32_5 = arith.constant 0 : i32
    %10 = arith.cmpi ne, %9, %c0_i32_5 : i32
    scf.if %10 {
      %cst_39 = arith.constant 0xFF800000 : f32
      %74 = vector.broadcast %cst_39 : f32 to vector<1x8xf32>
      %75 = arith.index_cast %arg1 : i32 to index
      %c0_40 = arith.constant 0 : index
      %c0_41 = arith.constant 0 : index
      %76 = vector.load %arg9[%75, %c0_40, %c0_41] : memref<4x1x8xf32, #tpu.memory_space<vmem>>, vector<1x1x8xf32>
      %77 = vector.shape_cast %76 : vector<1x1x8xf32> to vector<1x8xf32>
      %78 = vector.shape_cast %74 : vector<1x8xf32> to vector<1x1x8xf32>
      tpu.vector_store %arg9[%75, %c0_40, %c0_41], %78 {strides = array<i32>} : memref<4x1x8xf32, #tpu.memory_space<vmem>>, vector<1x1x8xf32>,
      %cst_42 = arith.constant 0.000000e+00 : f32
      %79 = vector.broadcast %cst_42 : f32 to vector<1x8xf32>
      %80 = arith.index_cast %arg1 : i32 to index
      %c0_43 = arith.constant 0 : index
      %c0_44 = arith.constant 0 : index
      %81 = vector.load %arg10[%80, %c0_43, %c0_44] : memref<4x1x8xf32, #tpu.memory_space<vmem>>, vector<1x1x8xf32>
      %82 = vector.shape_cast %81 : vector<1x1x8xf32> to vector<1x8xf32>
      %83 = vector.shape_cast %79 : vector<1x8xf32> to vector<1x1x8xf32>
      tpu.vector_store %arg10[%80, %c0_43, %c0_44], %83 {strides = array<i32>} : memref<4x1x8xf32, #tpu.memory_space<vmem>>, vector<1x1x8xf32>,
    } else {
    }
    %c0 = arith.constant 0 : index
    %11 = memref.load %arg2[%c0] : memref<1xf32, #tpu.memory_space<smem>>
    %c0_6 = arith.constant 0 : index
    %c0_7 = arith.constant 0 : index
    %12 = vector.load %arg3[%c0_6, %c0_7] : memref<8x64xf32, #tpu.memory_space<vmem>>, vector<8x64xf32>
    %13 = vector.broadcast %11 : f32 to vector<8x64xf32>
    %14 = arith.mulf %12, %13 : vector<8x64xf32>
    %c0_8 = arith.constant 0 : index
    %c0_9 = arith.constant 0 : index
    %15 = vector.load %arg4[%c0_8, %c0_9] : memref<8x64xf32, #tpu.memory_space<vmem>>, vector<8x64xf32>
    %cst = arith.constant dense<0.000000e+00> : vector<8x8xf32>
    %16 = tpu.matmul %14, %15, %cst {dimension_numbers = #tpu.dot_dimension_numbers<[1], [1], [0], [0], [0, 0, 1, 0], [], []>} : vector<8x64xf32>, vector<8x64xf32>, vector<8x8xf32> -> vector<8x8xf32>
    %cst_10 = arith.constant dense<0xFF800000> : vector<8xf32>
    %17 = vector.multi_reduction <maximumf>, %16, %cst_10 [1] : vector<8x8xf32> to vector<8xf32>
    %18 = vector.shape_cast %17 : vector<8xf32> to vector<8x1xf32>
    %c0_11 = arith.constant 0 : index
    %c0_12 = arith.constant 0 : index
    %19 = vector.load %arg7[%c0_11, %c0_12] : memref<8x1xf32, #tpu.memory_space<vmem>>, vector<8x1xf32>
    %20 = arith.maximumf %19, %18 : vector<8x1xf32>
    %c0_13 = arith.constant 0 : index
    %c0_14 = arith.constant 0 : index
    %21 = vector.load %arg8[%c0_13, %c0_14] : memref<8x1xf32, #tpu.memory_space<vmem>>, vector<8x1xf32>
    %c0_15 = arith.constant 0 : index
    %c0_16 = arith.constant 0 : index
    %22 = vector.load %arg7[%c0_15, %c0_16] : memref<8x1xf32, #tpu.memory_space<vmem>>, vector<8x1xf32>
    %23 = arith.subf %22, %20 : vector<8x1xf32>
    %24 = math.exp %23 : vector<8x1xf32>
    %25 = arith.mulf %21, %24 : vector<8x1xf32>
    %26 = vector.broadcast %20 : vector<8x1xf32> to vector<8x8xf32>
    %27 = arith.subf %16, %26 : vector<8x8xf32>
    %28 = math.exp %27 : vector<8x8xf32>
    %cst_17 = arith.constant dense<0.000000e+00> : vector<8xf32>
    %29 = vector.multi_reduction <add>, %28, %cst_17 [1] : vector<8x8xf32> to vector<8xf32>
    %30 = vector.shape_cast %29 : vector<8xf32> to vector<8x1xf32>
    %31 = arith.addf %25, %30 : vector<8x1xf32>
    %c0_18 = arith.constant 0 : index
    %c0_19 = arith.constant 0 : index
    %32 = vector.load %arg8[%c0_18, %c0_19] : memref<8x1xf32, #tpu.memory_space<vmem>>, vector<8x1xf32>
    tpu.vector_store %arg8[%c0_18, %c0_19], %31 {strides = array<i32>} : memref<8x1xf32, #tpu.memory_space<vmem>>, vector<8x1xf32>,
    %c0_20 = arith.constant 0 : index
    %c0_21 = arith.constant 0 : index
    %33 = vector.load %arg7[%c0_20, %c0_21] : memref<8x1xf32, #tpu.memory_space<vmem>>, vector<8x1xf32>
    tpu.vector_store %arg7[%c0_20, %c0_21], %20 {strides = array<i32>} : memref<8x1xf32, #tpu.memory_space<vmem>>, vector<8x1xf32>,
    %cst_22 = arith.constant dense<0xFF800000> : vector<8xf32>
    %34 = vector.multi_reduction <maximumf>, %16, %cst_22 [0] : vector<8x8xf32> to vector<8xf32>
    %35 = vector.shape_cast %34 : vector<8xf32> to vector<1x8xf32>
    %36 = arith.index_cast %arg1 : i32 to index
    %c0_23 = arith.constant 0 : index
    %c0_24 = arith.constant 0 : index
    %37 = vector.load %arg9[%36, %c0_23, %c0_24] : memref<4x1x8xf32, #tpu.memory_space<vmem>>, vector<1x1x8xf32>
    %38 = vector.shape_cast %37 : vector<1x1x8xf32> to vector<1x8xf32>
    %39 = arith.maximumf %38, %35 : vector<1x8xf32>
    %40 = arith.index_cast %arg1 : i32 to index
    %c0_25 = arith.constant 0 : index
    %c0_26 = arith.constant 0 : index
    %41 = vector.load %arg10[%40, %c0_25, %c0_26] : memref<4x1x8xf32, #tpu.memory_space<vmem>>, vector<1x1x8xf32>
    %42 = vector.shape_cast %41 : vector<1x1x8xf32> to vector<1x8xf32>
    %43 = arith.subf %38, %39 : vector<1x8xf32>
    %44 = math.exp %43 : vector<1x8xf32>
    %45 = arith.mulf %42, %44 : vector<1x8xf32>
    %46 = vector.broadcast %39 : vector<1x8xf32> to vector<8x8xf32>
    %47 = arith.subf %16, %46 : vector<8x8xf32>
    %48 = math.exp %47 : vector<8x8xf32>
    %cst_27 = arith.constant dense<0.000000e+00> : vector<8xf32>
    %49 = vector.multi_reduction <add>, %48, %cst_27 [0] : vector<8x8xf32> to vector<8xf32>
    %50 = vector.shape_cast %49 : vector<8xf32> to vector<1x8xf32>
    %51 = arith.addf %45, %50 : vector<1x8xf32>
    %52 = arith.index_cast %arg1 : i32 to index
    %c0_28 = arith.constant 0 : index
    %c0_29 = arith.constant 0 : index
    %53 = vector.load %arg9[%52, %c0_28, %c0_29] : memref<4x1x8xf32, #tpu.memory_space<vmem>>, vector<1x1x8xf32>
    %54 = vector.shape_cast %53 : vector<1x1x8xf32> to vector<1x8xf32>
    %55 = vector.shape_cast %39 : vector<1x8xf32> to vector<1x1x8xf32>
    tpu.vector_store %arg9[%52, %c0_28, %c0_29], %55 {strides = array<i32>} : memref<4x1x8xf32, #tpu.memory_space<vmem>>, vector<1x1x8xf32>,
    %56 = arith.index_cast %arg1 : i32 to index
    %c0_30 = arith.constant 0 : index
    %c0_31 = arith.constant 0 : index
    %57 = vector.load %arg10[%56, %c0_30, %c0_31] : memref<4x1x8xf32, #tpu.memory_space<vmem>>, vector<1x1x8xf32>
    %58 = vector.shape_cast %57 : vector<1x1x8xf32> to vector<1x8xf32>
    %59 = vector.shape_cast %51 : vector<1x8xf32> to vector<1x1x8xf32>
    tpu.vector_store %arg10[%56, %c0_30, %c0_31], %59 {strides = array<i32>} : memref<4x1x8xf32, #tpu.memory_space<vmem>>, vector<1x1x8xf32>,
    %60 = arith.cmpi eq, %arg0, %arg1 : i32
    %61 = arith.extui %60 : i1 to i32
    %c0_i32_32 = arith.constant 0 : i32
    %62 = arith.cmpi ne, %61, %c0_i32_32 : i32
    scf.if %62 {
      %c0_39 = arith.constant 0 : index
      %c0_40 = arith.constant 0 : index
      %74 = vector.load %arg4[%c0_39, %c0_40] : memref<8x64xf32, #tpu.memory_space<vmem>>, vector<8x64xf32>
      %75 = arith.mulf %14, %74 : vector<8x64xf32>
      %cst_41 = arith.constant dense<0.000000e+00> : vector<8xf32>
      %76 = vector.multi_reduction <add>, %75, %cst_41 [1] : vector<8x64xf32> to vector<8xf32>
      %77 = vector.shape_cast %76 : vector<8xf32> to vector<8x1xf32>
      %c0_42 = arith.constant 0 : index
      %c0_43 = arith.constant 0 : index
      %78 = vector.load %arg6[%c0_42, %c0_43] : memref<8x1xf32, #tpu.memory_space<vmem>>, vector<8x1xf32>
      %cst_44 = arith.constant 2.000000e+00 : f32
      %79 = vector.broadcast %cst_44 : f32 to vector<8x1xf32>
      %80 = arith.mulf %79, %77 : vector<8x1xf32>
      %81 = arith.subf %78, %80 : vector<8x1xf32>
      %c0_45 = arith.constant 0 : index
      %c0_46 = arith.constant 0 : index
      %82 = vector.load %arg6[%c0_45, %c0_46] : memref<8x1xf32, #tpu.memory_space<vmem>>, vector<8x1xf32>
      tpu.vector_store %arg6[%c0_45, %c0_46], %81 {strides = array<i32>} : memref<8x1xf32, #tpu.memory_space<vmem>>, vector<8x1xf32>,
    } else {
    }
    %c3_i32 = arith.constant 3 : i32
    %63 = arith.cmpi eq, %arg1, %c3_i32 : i32
    %64 = arith.extui %63 : i1 to i32
    %c0_i32_33 = arith.constant 0 : i32
    %65 = arith.cmpi ne, %64, %c0_i32_33 : i32
    scf.if %65 {
      %c0_39 = arith.constant 0 : index
      %c0_40 = arith.constant 0 : index
      %74 = vector.load %arg6[%c0_39, %c0_40] : memref<8x1xf32, #tpu.memory_space<vmem>>, vector<8x1xf32>
      %c0_41 = arith.constant 0 : index
      %c0_42 = arith.constant 0 : index
      %75 = vector.load %arg7[%c0_41, %c0_42] : memref<8x1xf32, #tpu.memory_space<vmem>>, vector<8x1xf32>
      %76 = arith.addf %74, %75 : vector<8x1xf32>
      %c0_43 = arith.constant 0 : index
      %c0_44 = arith.constant 0 : index
      %77 = vector.load %arg8[%c0_43, %c0_44] : memref<8x1xf32, #tpu.memory_space<vmem>>, vector<8x1xf32>
      %78 = math.log %77 : vector<8x1xf32>
      %79 = arith.addf %76, %78 : vector<8x1xf32>
      %c0_45 = arith.constant 0 : index
      %c0_46 = arith.constant 0 : index
      %80 = vector.load %arg6[%c0_45, %c0_46] : memref<8x1xf32, #tpu.memory_space<vmem>>, vector<8x1xf32>
      tpu.vector_store %arg6[%c0_45, %c0_46], %79 {strides = array<i32>} : memref<8x1xf32, #tpu.memory_space<vmem>>, vector<8x1xf32>,
    } else {
    }
    %c3_i32_34 = arith.constant 3 : i32
    %66 = arith.cmpi eq, %arg0, %c3_i32_34 : i32
    %67 = arith.extui %66 : i1 to i32
    %c0_i32_35 = arith.constant 0 : i32
    %68 = arith.cmpi ne, %67, %c0_i32_35 : i32
    scf.if %68 {
      %c0_39 = arith.constant 0 : index
      %c0_40 = arith.constant 0 : index
      %74 = vector.load %arg11[%c0_39, %c0_40] : memref<1x1xf32, #tpu.memory_space<vmem>>, vector<1x1xf32>
      %75 = math.log %51 : vector<1x8xf32>
      %76 = arith.addf %39, %75 : vector<1x8xf32>
      %cst_41 = arith.constant dense<0.000000e+00> : vector<1xf32>
      %77 = vector.multi_reduction <add>, %76, %cst_41 [1] : vector<1x8xf32> to vector<1xf32>
      %78 = vector.shape_cast %77 : vector<1xf32> to vector<1x1xf32>
      %79 = arith.addf %74, %78 : vector<1x1xf32>
      %c0_42 = arith.constant 0 : index
      %c0_43 = arith.constant 0 : index
      %80 = vector.load %arg11[%c0_42, %c0_43] : memref<1x1xf32, #tpu.memory_space<vmem>>, vector<1x1xf32>
      tpu.vector_store %arg11[%c0_42, %c0_43], %79 {strides = array<i32>} : memref<1x1xf32, #tpu.memory_space<vmem>>, vector<1x1xf32>,
    } else {
    }
    %c3_i32_36 = arith.constant 3 : i32
    %69 = arith.cmpi eq, %arg0, %c3_i32_36 : i32
    %c3_i32_37 = arith.constant 3 : i32
    %70 = arith.cmpi eq, %arg1, %c3_i32_37 : i32
    %71 = arith.andi %69, %70 : i1
    %72 = arith.extui %71 : i1 to i32
    %c0_i32_38 = arith.constant 0 : i32
    %73 = arith.cmpi ne, %72, %c0_i32_38 : i32
    scf.if %73 {
      %c0_39 = arith.constant 0 : index
      %c0_40 = arith.constant 0 : index
      %74 = vector.load %arg6[%c0_39, %c0_40] : memref<8x1xf32, #tpu.memory_space<vmem>>, vector<8x1xf32>
      %cst_41 = arith.constant dense<0.000000e+00> : vector<1xf32>
      %75 = vector.multi_reduction <add>, %74, %cst_41 [0] : vector<8x1xf32> to vector<1xf32>
      %76 = vector.shape_cast %75 : vector<1xf32> to vector<1x1xf32>
      %c0_42 = arith.constant 0 : index
      %c0_43 = arith.constant 0 : index
      %77 = vector.load %arg11[%c0_42, %c0_43] : memref<1x1xf32, #tpu.memory_space<vmem>>, vector<1x1xf32>
      %78 = arith.addf %76, %77 : vector<1x1xf32>
      %cst_44 = arith.constant 1.562500e-02 : f32
      %79 = vector.broadcast %cst_44 : f32 to vector<1x1xf32>
      %80 = arith.mulf %78, %79 : vector<1x1xf32>
      %c0_45 = arith.constant 0 : index
      %c0_46 = arith.constant 0 : index
      %81 = vector.load %arg5[%c0_45, %c0_46] : memref<1x1xf32, #tpu.memory_space<vmem>>, vector<1x1xf32>
      tpu.vector_store %arg5[%c0_45, %c0_46], %80 {strides = array<i32>} : memref<1x1xf32, #tpu.memory_space<vmem>>, vector<1x1xf32>,
    } else {
    }
    return
  }
  func.func @transform_0(%arg0: i32, %arg1: i32, %arg2: memref<1xf32, #tpu.memory_space<smem>>) -> (i32, i32) {
    %c0_i32 = arith.constant 0 : i32
    %c0_i32_0 = arith.constant 0 : i32
    return %arg0, %c0_i32 : i32, i32
  }
  func.func @transform_1(%arg0: i32, %arg1: i32, %arg2: memref<1xf32, #tpu.memory_space<smem>>) -> (i32, i32) {
    %c0_i32 = arith.constant 0 : i32
    %c0_i32_0 = arith.constant 0 : i32
    return %arg1, %c0_i32 : i32, i32
  }
  func.func @transform_2(%arg0: i32, %arg1: i32, %arg2: memref<1xf32, #tpu.memory_space<smem>>) -> (i32, i32) {
    %c0_i32 = arith.constant 0 : i32
    %c0_i32_0 = arith.constant 0 : i32
    %c0_i32_1 = arith.constant 0 : i32
    return %c0_i32, %c0_i32_0 : i32, i32
  }
}

</mosaic_0001>

<bundles_post_ra>
// kernel: tpu_custom_call.1
= control target key start
LH: loop header
LB: loop body
LE: loop exit
PB: predicated region body
PF: predicated region fallthrough
CT: control target
= control target key end

     0   :  { %s1155_s0 = inlined_call_operand.<no memory space> [shape: f32[1], index: 0, kind: input, shape index: {}]   ;;  %s1156_s1 = inlined_call_operand.hbm [shape: f32[32,64], index: 1, kind: input, shape index: {}]   ;;  %s1157_s2 = inlined_call_operand.hbm [shape: f32[32,64], index: 2, kind: input, shape index: {}]   ;;  %s1158_s3 = inlined_call_operand.hbm [shape: f32[1,1], index: 3, kind: output, shape index: {}]  }
   0x1   :  { %1161 = sst [smem:[#allocation19_spill]] %s1156_s1 }
   0x2   :  { %8 = sst [smem:[#allocation9]] %s1155_s0 }
   0x3   :  { %9 = vsyncpa [#allocation11], 0 }
   0x4   :  { %11 = vsyncpa [#allocation11 + $0x1], 0 }
   0x5   :  { %12 = vsyncpa [#allocation14], 0 }
   0x6   :  { %14 = vsyncpa [#allocation14 + $0x1], 0 }
   0x7   :  { %15 = vsyncpa [#allocation12], 0  ;;  %s887_s14 = smov 0   ;;  %s889_s15 = smov 0  }
   0x8   :  { %s891_s16 = smov 0   ;;  %s893_s17 = smov 0  }
   0x9   :  { %s895_s18 = smov 0   ;;  %s897_s19 = smov 0  }
   0xa   :  { %s899_s20 = smov 0   ;;  %s901_s0 = smov 0  }
   0xb   :  { %s903_s21 = smov 0   ;;  %s905_s22 = smov 0  }
   0xc   :  { %s907_s23 = smov 0  }
   0xd LB: > { %s1160_s24 = sadd.s32 4294967295, %s851_s23   ;;  %s33_s25 = sadd.s32 1, %s847_s22  ;;  %s851_s23 = sphi %s907_s23, %s21_s23   ;;  %s847_s22 = sphi %s905_s22, %s1183_s22   ;;  %s843_s21 = sphi %s903_s21, %s1182_s21   ;;  %s839_s0 = sphi %s901_s0, %s1181_s0   ;;  %s835_s20 = sphi %s899_s20, %s1180_s20   ;;  %s831_s19 = sphi %s897_s19, %s1179_s19   ;;  %s827_s18 = sphi %s895_s18, %s1178_s18   ;;  %s823_s17 = sphi %s893_s17, %s1177_s17   ;;  %s819_s16 = sphi %s891_s16, %s1176_s16   ;;  %s815_s15 = sphi %s889_s15, %s1175_s15   ;;  %s811_s14 = sphi %s887_s14, %s1174_s14  }
   0xe   : > { %p47_p0 = scmp.ne.s32.totalorder %s831_s19, %s827_s18  ;;  %p48_p1 = scmp.eq.s32.totalorder %s851_s23, 0 }
   0xf   : > { %p53_p2 = scmp.ne.s32.totalorder %s827_s18, %s823_s17  ;;  %p948_p3 = scmp.eq.s32.totalorder %s1160_s24, 0 }
  0x10   : > { %p49_p4 = por %p48_p1, %p47_p0  ;;  %p1159_p5 = scmp.lt.s32.totalorder %s851_s23, 16 }
  0x11   : > { %p957_p6 = por %p948_p3, %p53_p2  ;;  %s124_s28 = sand.u32 1, %s831_s19  }
  0x12   : > { %s520_s29 = sshll.u32 %s124_s28, 3  ;;  %s521_s30 = sshll.u32 %s847_s22, 7 }
  0x13   : > { %s1164_s1 = sld [smem:[#allocation19_spill]]  ;;  %s128_s7 = scalar_lea.vmem [#allocation10], %s520_s29 }
  0x14   : > { %s135_s8 = sshll.u32 %s128_s7, 4  ;;  %p968_p7 = pnand %p1159_p5, %p49_p4  ;;  %s136_s8 = int_to_ptr.vmem [resolvable:$true] %s135_s8 }
  0x15   : > { %p524_p8 = scmp.ge.s32.totalorder %s851_s23, 1  ;;  %p158_p9 = scmp.lt.s32.totalorder %s851_s23, 17 }
  0x16   : > { %s125_s10 = scalar_lea.sflag [#allocation11], %s124_s28  ;;  %p675_p10 = pneg %p968_p7 }
  0x17   : > { %s686_s11 = scalar_lea.vmem %s136_s8, 128  ;;  %s853_s12 = smov [#allocation10]  }
  0x18   : > { %p687_p11 = scmp.ne.s32.totalorder %s136_s8, %s686_s11  ;;  %s691_s13 = sshll.u32 %s853_s12, 4  ;;  %s692_s13 = int_to_ptr.vmem [resolvable:$false] %s691_s13 }
  0x19   : > { %s133_s6 = scalar_lea.hbm %s1164_s1, %s521_s30  ;;  %s693_s17 = scalar_lea.vmem %s692_s13, 256 }
  0x1a   : > { %p689_p12 = pnand %p687_p11, %p675_p10  ;;  %p694_p0 = scmp.lt.s32.totalorder %s136_s8, %s692_s13 }
  0x1b   : > { %p695_p2 = scmp.lt.s32.totalorder %s693_s17, %s686_s11 }
  0x1c   : > { %p690_p13 = pneg %p689_p12 }
  0x1d   : > { %p696_p4 = por %p695_p2, %p694_p0 }
  0x1f   : > { %p697_p5 = pnand %p696_p4, %p690_p13 }
  0x21   : > { %700 = shalt.err (!%p697_p5)
}
  0x22   : > { %556 = dma.hbm_to_vmem [thread:$0]  (!%p968_p7), %s133_s6, 128, %s136_s8, %s125_s10  }
  0x23   : > { %p982_p5 = pnand %p524_p8, %p158_p9  ;;  %s40_s29 = sadd.s32 1, %s831_s19 }
  0x24   : > { %s30_s30 = sadd.s32 1, %s843_s21  ;;  %s66_s4 = sadd.s32 1, %s819_s16 }
  0x25   : > { %p31_p10 = scmp.ge.s32.totalorder %s30_s30, 4  ;;  %p73_p11 = scmp.ne.s32.totalorder %s819_s16, %s815_s15 }
  0x26   : > { %p79_p12 = scmp.ne.s32.totalorder %s815_s15, %s811_s14  ;;  %s142_s6 = sand.u32 1, %s819_s16  }
  0x27   : > { %s1185_s30 = smov (%p31_p10, %s30_s30), 0  ;;  %s1187_s25 = smov (!%p31_p10, %s33_s25), %s847_s22 }
  0x28   : > { %s63_s5 = ssub.s32 %s843_s21, %s1185_s30  ;;  %p35_p7 = scmp.ge.s32.totalorder %s1187_s25, 4 }
  0x29   : > { %p64_p8 = scmp.eq.s32.totalorder %s63_s5, 0  ;;  %p1003_p9 = por %p73_p11, %p48_p1 }
  0x2a   : > { %p1009_p13 = por %p79_p12, %p948_p3  ;;  %s1189_s25 = smov (%p35_p7, %s1187_s25), 0 }
  0x2b   : > { %s1016_s8 = scalar_select %p64_p8, %s819_s16, %s66_s4  }
  0x2c   : > { %s37_s9 = ssub.s32 %s847_s22, %s1189_s25  ;;  %s522_s10 = sshll.u32 %s142_s6, 3 }
  0x2d   : > { %p38_p0 = scmp.eq.s32.totalorder %s37_s9, 0  ;;  %s523_s11 = sshll.u32 %s843_s21, 7 }
  0x2e   : > { %s146_s12 = scalar_lea.vmem [#allocation13], %s522_s10  ;;  %s151_s24 = scalar_lea.hbm %s1157_s2, %s523_s11 }
  0x2f   : > { %s153_s13 = sshll.u32 %s146_s12, 4  ;;  %p1169_p1 = scmp.lt.s32.totalorder %s851_s23, 16  ;;  %s154_s13 = int_to_ptr.vmem [resolvable:$true] %s153_s13 }
  0x30   : > { %s1022_s17 = scalar_select %p38_p0, %s831_s19, %s40_s29  }
  0x31   : > { %p1031_p3 = pnand %p1169_p1, %p1003_p9  ;;  %s143_s4 = scalar_lea.sflag [#allocation14], %s142_s6 }
  0x32   : > { %s714_s9 = scalar_lea.vmem %s154_s13, 128  ;;  %s854_s29 = smov [#allocation13]  }
  0x33   : > { %p703_p2 = pneg %p1031_p3  ;;  %p715_p4 = scmp.ne.s32.totalorder %s154_s13, %s714_s9 }
  0x34   : > { %s719_s10 = sshll.u32 %s854_s29, 4  ;;  %s720_s10 = int_to_ptr.vmem [resolvable:$false] %s719_s10 }
  0x35   : > { %p717_p10 = pnand %p715_p4, %p703_p2  ;;  %s721_s12 = scalar_lea.vmem %s720_s10, 256 }
  0x36   : > { %p722_p12 = scmp.lt.s32.totalorder %s154_s13, %s720_s10  ;;  %p723_p7 = scmp.lt.s32.totalorder %s721_s12, %s714_s9 }
  0x37   : > { %p718_p11 = pneg %p717_p10 }
  0x38   : > { %p724_p8 = por %p723_p7, %p722_p12 }
  0x3a   : > { %p725_p0 = pnand %p724_p8, %p718_p11 }
  0x3c   : > { %728 = shalt.err (!%p725_p0)
}
  0x3d   : > { %559 = dma.hbm_to_vmem [thread:$0]  (!%p1031_p3), %s151_s24, 128, %s154_s13, %s143_s4  }
  0x3e   : > { %162 = sbr.rel (%p982_p5) target bundleno = 1111 (0x457), region = 28  ;;  %s164_s6 = sand.u32 (!%p982_p5), 1, %s827_s18  }
  0x3f   : > { %s1042_s7 = sshll.u32 (!%p982_p5), %s164_s6, 3  ;;  %s165_s11 = scalar_lea.sflag (!%p982_p5), [#allocation11], %s164_s6 }
  0x40   : > { %s168_s5 = scalar_lea.vmem (!%p982_p5), [#allocation10], %s1042_s7 }
  0x43   : > { %798 = dma.done.wait (%p957_p6), %s165_s11, 128  }
  0x44   : > { %800 = vsyncadd (%p957_p6), %s165_s11, 4294967168  ;;  %s173_s1 = sand.u32 1, %s815_s15  }
  0x45   : > { %s1050_s24 = sshll.u32 %s173_s1, 3  ;;  %s174_s28 = scalar_lea.sflag [#allocation14], %s173_s1 }
  0x46   : > { %s177_s13 = scalar_lea.vmem [#allocation13], %s1050_s24 }
  0x47   : > { %802 = dma.done.wait (%p1009_p13), %s174_s28, 128  }
  0x48   : > { %804 = vsyncadd (%p1009_p13), %s174_s28, 4294967168  ;;  %p198_p5 = scmp.eq.s32.totalorder %s839_s0, 0  ;;  %p199_p9 = scmp.eq.s32.totalorder %s835_s20, 0 }
  0x4a   : > { %p200_p1 = pnand %p199_p9, %p198_p5 }
  0x4c   : > { %203 = sbr.rel (%p200_p1) target bundleno = 84 (0x54), region = 40 }
  0x51   : > { %vm204_vm0 = vcmask 7168   ;;  %vm206_vm1 = vcmask 0   ;;  %v855_v0 = vmov 0.0  }
  0x52   : > { %205 = vst.msk [vmem:[#allocation2] sm:$0xff] %vm204_vm0, %v855_v0 }
  0x53   : > { %207 = vst.msk [vmem:[#allocation7] sm:$0x1] %vm206_vm1, %v855_v0 }
  0x54 PF: > { %p527_p6 = scmp.ne.s32.totalorder %s835_s20, 0 }
  0x56   : > { %210 = sbr.rel (%p527_p6) target bundleno = 93 (0x5d), region = 44 }
  0x5b   : > { %vm211_vm2 = vcmask 7168   ;;  %v856_v1 = vmov -inf   ;;  %v857_v2 = vmov 0.0  }
  0x5c   : > { %212 = vst.msk [vmem:[#allocation3] sm:$0xff] %vm211_vm2, %v856_v1  ;;  %213 = vst.msk [vmem:[#allocation4] sm:$0xff] %vm211_vm2, %v857_v2 }
  0x5d PF: > { %p528_p13 = scmp.ne.s32.totalorder %s839_s0, 0 }
  0x5e   : > { %s217_s27 = scalar_lea.vmem (!%p528_p13), [#allocation5], %s835_s20  ;;  %s220_s14 = scalar_lea.vmem (!%p528_p13), [#allocation6], %s835_s20 }
  0x5f   : > { %216 = sbr.rel (%p528_p13) target bundleno = 102 (0x66), region = 48 }
  0x64   : > { %vm218_vm3 = vcmask 57344   ;;  %v858_v3 = vmov -inf   ;;  %v859_v4 = vmov 0.0  }
  0x65   : > { %219 = vst.msk [vmem:[%s217_s27] sm:$0x1] %vm218_vm3, %v858_v3  ;;  %221 = vst.msk [vmem:[%s220_s14] sm:$0x1] %vm218_vm3, %v859_v4 }
  0x66 PF: > { %v226_v5 = vld [vmem:[%s177_s13] sm:$0xff]  ;;  %vm227_vm4 = vcmask 523264   ;;  %s222_s26 = sld [smem:[#allocation9]]  ;;  %v860_v6 = vmov 0.0   ;;  %vm861_vm5 = vmmov 0   ;;  %v223_v7 = vld [vmem:[%s168_s5] sm:$0xff]  ;;  %v346_v14 = vlaneseq  ;;  %p531_p3 = scmp.ne.s32.totalorder %s839_s0, %s835_s20 }
  0x67   : > { %540 = vmatprep.subr.mxu0 %v860_v6  ;;  %542 = vmatprep.mubr.msk.f32.mxu0 %vm861_vm5, %v860_v6  ;;  %vm304_vm6 = vcmask 64512   ;;  %s336_s4 = scalar_lea.vmem [#allocation5], %s835_s20  ;;  %vm362_vm7 = vcmask 57344   ;;  %v862_v23 = vmov 0   ;;  %s339_s9 = scalar_lea.vmem [#allocation6], %s835_s20  ;;  %v308_v42 = vld [vmem:[#allocation3] sm:$0xff] }
  0x68   : > { %541 = vmatpush3.xpose.msk.msra.mxu0 %vm227_vm4, %v226_v5  ;;  %v347_v17 = vshrl.u32 %v346_v14, 7  ;;  %660 = vset.pattern.permute.xlu0 %v862_v23  ;;  %vm327_vm8 = vcmask 7168   ;;  %v310_v53 = vld [vmem:[#allocation4] sm:$0xff] }
  0x6a   : > { %v348_v21 = vsub.s32 0, %v347_v17 }
  0x6c   : > { %v224_v8 = vstv %s222_s26  ;;  %v337_v20 = vld [vmem:[%s336_s4] sm:$0x1] }
  0x6d   : > { %v1068_v9 = vmul.f32 %v224_v8, %v223_v7  ;;  %v340_v37 = vld [vmem:[%s339_s9] sm:$0x1] }
  0x6f   : > { %543 = vmatmul.mubr.msk.f32.vlgmr.msra.gmra.mxu0 %vm227_vm4, %v1068_v9 }
 0x12f   : > { %v300_v10 = vpop.f32.mrf.mxu0 }
 0x130   : > { %v305_v11 = vsel %vm304_vm6, %v300_v10, -inf }
 0x131   : > { %306 = vmax.xlane.f32.xlu0 %v305_v11  ;;  %v330_v12 = vrot.slane %v305_v11, 4  ;;  %v544_v13 = vpop.f32.mrf.mxu0 }
 0x133   : > { %v331_v15 = vmax.f32 %v305_v11, %v330_v12 }
 0x135   : > { %v332_v16 = vrot.slane %v331_v15, 2 }
 0x137   : > { %v333_v18 = vmax.f32 %v331_v15, %v332_v16 }
 0x139   : > { %v334_v19 = vrot.slane %v333_v18, 1 }
 0x13b   : > { %v335_v22 = vmax.f32 %v333_v18, %v334_v19 }
 0x13d   : > { %v1074_v24 = vmax.f32 %v337_v20, %v335_v22 }
 0x13f   : > { %v349_v25 = vrot.slane %v1074_v24, %v348_v21  ;;  %363 = vst.msk [vmem:[%s336_s4] sm:$0x1] %vm362_vm7, %v1074_v24  ;;  %v341_v28 = vsub.f32 %v337_v20, %v1074_v24 }
 0x141   : > { %v351_v26 = vsub.f32 %v300_v10, %v349_v25  ;;  %v342_v29 = vmul.f32 1.442695, %v341_v28 }
 0x143   : > { %v352_v27 = vmul.f32 1.442695, %v351_v26 }
 0x145   : > { %661 = vpow2.f32 %v352_v27 }
 0x146   : > { %663 = vpow2.f32 %v342_v29 }
 0x152   : > { %v662_v30 = vpop.eup %661 }
 0x153   : > { %v354_v31 = vsel %vm304_vm6, %v662_v30, 0.0  ;;  %v664_v36 = vpop.eup %663 }
 0x154   : > { %v355_v32 = vrot.slane %v354_v31, 4  ;;  %v344_v39 = vmul.f32 %v664_v36, %v340_v37 }
 0x156   : > { %v356_v33 = vadd.f32 %v355_v32, %v354_v31 }
 0x158   : > { %v357_v34 = vrot.slane %v356_v33, 2 }
 0x15a   : > { %v358_v35 = vadd.f32 %v357_v34, %v356_v33 }
 0x15c   : > { %v359_v38 = vrot.slane %v358_v35, 1 }
 0x15e   : > { %v360_v40 = vadd.f32 %v359_v38, %v358_v35 }
 0x160   : > { %v361_v41 = vadd.f32 %v360_v40, %v344_v39 }
 0x162   : > { %364 = vst.msk [vmem:[%s339_s9] sm:$0x1] %vm362_vm7, %v361_v41 }
 0x1ba   : > { %v307_v43 = vpop.xlane.xlu0 %306 }
 0x1bb   : > { %v309_v44 = vmax.f32 %v308_v42, %v307_v43 }
 0x1bd   : > { %v311_v45 = vsub.f32 %v308_v42, %v309_v44  ;;  %329 = vst.msk [vmem:[#allocation3] sm:$0xff] %vm327_vm8, %v309_v44  ;;  %317 = vperm.xlu0 %660, %v309_v44  }
 0x1bf   : > { %v312_v51 = vmul.f32 1.442695, %v311_v45 }
 0x238   : > { %v318_v46 = vpop.permute.xlu0 %317 }
 0x239   : > { %v320_v47 = vsub.f32 %v300_v10, %v318_v46 }
 0x23b   : > { %v321_v48 = vmul.f32 1.442695, %v320_v47 }
 0x23d   : > { %665 = vpow2.f32 %v321_v48 }
 0x23e   : > { %667 = vpow2.f32 %v312_v51 }
 0x24a   : > { %v666_v49 = vpop.eup %665 }
 0x24b   : > { %v323_v50 = vsel %vm304_vm6, %v666_v49, 0.0  ;;  %v668_v52 = vpop.eup %667 }
 0x24c   : > { %324 = vadd.xlane.f32.xlu1 %v323_v50  ;;  %v314_v54 = vmul.f32 %v668_v52, %v310_v53 }
 0x2d4   : > { %368 = sbr.rel (%p531_p3) target bundleno = 876 (0x36c), region = 52 }
 0x2d5   : > { %v325_v55 = vpop.xlane.xlu1 %324 }
 0x2d6   : > { %v326_v56 = vadd.f32 %v325_v55, %v314_v54 }
 0x2d8   : > { %328 = vst.msk [vmem:[#allocation4] sm:$0xff] %vm327_vm8, %v326_v56 }
 0x2d9   : > { %v369_v57 = vld [vmem:[%s177_s13] sm:$0xff] }
 0x2da   : > { %v370_v58 = vmul.f32 %v369_v57, %v1068_v9  ;;  %v374_v61 = vld [vmem:[#allocation2] sm:$0xff] }
 0x2dc   : > { %v371_v59 = vsel %vm227_vm4, %v370_v58, 0.0 }
 0x2dd   : > { %372 = vadd.xlane.f32.xlu0 %v371_v59 }
 0x366   : > { %v373_v60 = vpop.xlane.xlu0 %372 }
 0x367   : > { %v375_v62 = vmul.f32 2.0, %v373_v60 }
 0x369   : > { %v376_v63 = vsub.f32 %v374_v61, %v375_v62 }
 0x36b   : > { %377 = vst.msk [vmem:[#allocation2] sm:$0xff] %vm327_vm8, %v376_v63 }
 0x36c PF: > { %p378_p2 = scmp.eq.s32.totalorder %s835_s20, 3  ;;  %p532_p4 = scmp.ne.s32.totalorder %s835_s20, 3 }
 0x36e   : > { %381 = sbr.rel (%p532_p4) target bundleno = 903 (0x387), region = 56 }
 0x373   : > { %v385_v0 = vld [vmem:[#allocation4] sm:$0xff]  ;;  %v382_v1 = vld [vmem:[#allocation2] sm:$0xff]  ;;  %v383_v2 = vld [vmem:[#allocation3] sm:$0xff] }
 0x374   : > { %669 = vlog2.f32 %v385_v0  ;;  %v384_v3 = vadd.f32 %v383_v2, %v382_v1 }
 0x381   : > { %v670_v4 = vpop.eup %669 }
 0x382   : > { %v387_v5 = vmul.f32 0.6931472, %v670_v4 }
 0x384   : > { %v388_v6 = vadd.f32 %v387_v5, %v384_v3 }
 0x386   : > { %389 = vst.msk [vmem:[#allocation2] sm:$0xff] %vm327_vm8, %v388_v6 }
 0x387 PF: > { %p390_p10 = scmp.eq.s32.totalorder %s839_s0, 3  ;;  %p533_p11 = scmp.ne.s32.totalorder %s839_s0, 3 }
 0x389   : > { %393 = sbr.rel (%p533_p11) target bundleno = 1070 (0x42e), region = 60 }
 0x38e   : > { %671 = vlog2.f32 %v361_v41  ;;  %v394_v11 = vld [vmem:[#allocation7] sm:$0x1]  ;;  %vm402_vm9 = vcmask 0  }
 0x39b   : > { %v672_v7 = vpop.eup %671 }
 0x39c   : > { %v396_v8 = vmul.f32 0.6931472, %v672_v7 }
 0x39e   : > { %v397_v9 = vadd.f32 %v396_v8, %v1074_v24 }
 0x3a0   : > { %v398_v10 = vsel %vm362_vm7, %v397_v9, 0.0 }
 0x3a1   : > { %399 = vadd.xlane.f32.xlu0 %v398_v10 }
 0x42a   : > { %v400_v12 = vpop.xlane.xlu0 %399 }
 0x42b   : > { %v401_v13 = vadd.f32 %v400_v12, %v394_v11 }
 0x42d   : > { %403 = vst.msk [vmem:[#allocation7] sm:$0x1] %vm402_vm9, %v401_v13 }
 0x42e PF: > { %p404_p12 = pnand %p390_p10, %p378_p2 }
 0x430   : > { %407 = sbr.rel (%p404_p12) target bundleno = 1096 (0x448), region = 64 }
 0x435   : > { %v408_v14 = vld [vmem:[#allocation2] sm:$0xff]  ;;  %vm419_vm10 = vcmask 0  }
 0x436   : > { %v409_v15 = vsel %vm327_vm8, %v408_v14, 0.0  ;;  %v416_v21 = vld [vmem:[#allocation7] sm:$0x1] }
 0x437   : > { %v410_v16 = vrot.slane %v409_v15, 4 }
 0x439   : > { %v411_v17 = vadd.f32 %v410_v16, %v409_v15 }
 0x43b   : > { %v412_v18 = vrot.slane %v411_v17, 2 }
 0x43d   : > { %v413_v19 = vadd.f32 %v412_v18, %v411_v17 }
 0x43f   : > { %v414_v20 = vrot.slane %v413_v19, 1 }
 0x441   : > { %v415_v22 = vadd.f32 %v414_v20, %v413_v19 }
 0x443   : > { %v417_v23 = vadd.f32 %v416_v21, %v415_v22 }
 0x445   : > { %v418_v24 = vmul.f32 0.015625, %v417_v23 }
 0x447   : > { %420 = vst.msk [vmem:[#allocation15] sm:$0x1] %vm419_vm10, %v418_v24 }
 0x448 PF: > { %s1171_s20 = sadd.s32 4294967295, %s851_s23   ;;  %s863_s29 = smov [#allocation15]  }
 0x449   : > { %p1107_p7 = scmp.eq.s32.totalorder %s1171_s20, 15  ;;  %s428_s10 = sshll.u32 %s863_s29, 4  ;;  %s429_s10 = int_to_ptr.vmem [resolvable:$true] %s428_s10 }
 0x44a   : > { %s729_s12 = scalar_lea.vmem %s429_s10, 16  ;;  %s735_s6 = scalar_lea.vmem %s429_s10, 32 }
 0x44b   : > { %p730_p8 = scmp.ne.s32.totalorder %s429_s10, %s729_s12  ;;  %p736_p9 = scmp.lt.s32.totalorder %s429_s10, %s429_s10 }
 0x44c   : > { %p737_p1 = scmp.lt.s32.totalorder %s735_s6, %s729_s12 }
 0x44d   : > { %p731_p0 = pnand %p730_p8, %p1107_p7 }
 0x44e   : > { %p738_p6 = por %p737_p1, %p736_p9 }
 0x44f   : > { %p732_p5 = pneg %p731_p0 }
 0x451   : > { %p739_p13 = pnand %p738_p6, %p732_p5 }
 0x453   : > { %742 = shalt.err (!%p739_p13)
}
 0x454   : > { %550 = dma.vmem_to_hbm [thread:$0]  (%p1107_p7), %s429_s10, 16, %s1158_s3, [#allocation12]  }
 0x455   : > { %806 = dma.done.wait (%p1107_p7), [#allocation12], 16  }
 0x456   : > { %808 = vsyncadd (%p1107_p7), [#allocation12], 4294967280 }
 0x457 PF: > { %s21_s23 = sadd.s32 1, %s851_s23   ;;  %s1173_s5 = smov %s1022_s17 }
 0x458   : > { %p18_p3 = scmp.ge.s32.totalorder %s21_s23, 18   ;;  %s1174_s14 = smov %s815_s15 }
 0x459   : > { %s1175_s15 = smov %s819_s16  ;;  %s1176_s16 = smov %s1016_s8 }
 0x45a   : > { %s1177_s17 = smov %s827_s18  ;;  %s1178_s18 = smov %s831_s19 }
 0x45b   : > { %s1179_s19 = smov %s1173_s5  ;;  %s1180_s20 = smov %s843_s21 }
 0x45c   : > { %s1181_s0 = smov %s847_s22  ;;  %s1182_s21 = smov %s1185_s30 }
 0x45d   : > { %s1183_s22 = smov %s1189_s25  ;;  %20 = sbr.rel (!%p18_p3) target bundleno = 13 (0xd), region = 110 }
 0x462   :  { %441 = vsyncpa [#allocation11], 1 }
 0x463   :  { %443 = vsyncpa [#allocation11 + $0x1], 1 }
 0x464   :  { %444 = vsyncpa [#allocation14], 1 }
 0x465   :  { %446 = vsyncpa [#allocation14 + $0x1], 1 }
 0x466   :  { %447 = vsyncpa [#allocation12], 1 }
 0x467   :  { %449 = vsyncpa [#allocation12 + $0x1], 1 }

</bundles_post_ra>
